<compile_context>
chip_gen: v7x
topology: tpu7x:2x2x1
jax: 0.10.0
libtpu: 0.0.40
codegen_flags: <defaults>
</compile_context>

<pallas_src>
import functools
import math

import jax
import jax.numpy as jnp
from jax import lax
from jax.experimental import pallas as pl
from jax.experimental.pallas import tpu as pltpu


DILATIONS = (1, 2, 4, 8, 16)


def _shift_rows(x, s):
    """result[t] = x[t + s], zero-padded outside [0, T). s is a static Python int."""
    T = x.shape[0]
    if s == 0:
        return x
    if s >= T or s <= -T:
        return jnp.zeros_like(x)
    if s > 0:
        return jnp.concatenate([x[s:], jnp.zeros((s, x.shape[1]), x.dtype)], axis=0)
    return jnp.concatenate([jnp.zeros((-s, x.shape[1]), x.dtype), x[:T + s]], axis=0)


def condition_embed_kernel(x_ref, w1_ref, wr_ref, b_ref, g_ref, m_ref, out_ref, h_scr, *,
                           dilations, tile_t, pad_rows):
    """Grid = (batch, L-tile).

    h_scr: (scr_rows, Clocal) f32 persistent scratch holding the edge-clamp-extended conv-stack
    output (plus a zeroed alignment tail) for the current batch element.
    """
    j = pl.program_id(1)

    # ---- dilated conv stack: run once per batch element (tile 0), persist in scratch ----
    @pl.when(j == 0)
    def _():
        T = x_ref.shape[1]
        h = x_ref[0].astype(jnp.float32)                       # (T, Cin), time-major
        n_layers = len(dilations)
        for i, d in enumerate(dilations):
            w_full = w1_ref[...] if i == 0 else wr_ref[i - 1]  # (3*cin, Cout), tap-major rows
            cin = h.shape[1]
            if d < T:
                # one fused-tap matmul per layer: concat([x[t-d], x[t], x[t+d]]) @ W_packed
                h_cat = jnp.concatenate(
                    [_shift_rows(h, -d), h, _shift_rows(h, d)], axis=1)   # (T, 3*cin)
                y = jnp.dot(h_cat, w_full, preferred_element_type=jnp.float32)
            else:
                # dilation >= T: outer taps only ever read zero padding -> center tap only.
                y = jnp.dot(h, w_full[cin:2 * cin, :], preferred_element_type=jnp.float32)
            y = y + b_ref[i]                                   # (1, Cout) broadcast
            h = y if i == n_layers - 1 else jnp.maximum(y, 0.0)

        # Edge-clamped extension (rows 0 / T+1 replicate the edges) so one periodic interp
        # matrix is valid for every L tile; zero the alignment tail so padded matmul rows
        # never read garbage.
        h_ext = jnp.concatenate([h[:1], h, h[-1:]], axis=0)    # (T+2, Clocal)
        pad_extra = h_scr.shape[0] - h_ext.shape[0]
        if pad_extra:
            h_ext = jnp.concatenate(
                [h_ext, jnp.zeros((pad_extra, h_ext.shape[1]), h_ext.dtype)], axis=0)
        h_scr[...] = h_ext

    # ---- per-tile linear upsample: tiny MXU matmul, already lane-dense (Clocal, TILE_L) ----
    Clocal = h_scr.shape[1]
    start = j * tile_t
    if tile_t % 8 == 0:
        start = pl.multiple_of(start, 8)                       # sublane-aligned dynamic slice
    h_slice = h_scr[pl.ds(start, pad_rows), :]                 # (pad_rows, Clocal)
    local_tile = jnp.dot(jnp.transpose(h_slice), m_ref[...],   # (Clocal, TILE_L)
                         preferred_element_type=jnp.float32)

    # Direct slab stores (no concat copy of the largest tensor).  Clocal is a multiple of 8,
    # so both stores are unmasked; if local_emb_dim were not, the second store becomes masked.
    out_ref[0, :Clocal, :] = local_tile.astype(out_ref.dtype)

    # ---- global embedding: nearest upsample of a length-1 signal == lane broadcast ----
    g_col = g_ref[0]                                           # (Cg, 1)
    out_ref[0, Clocal:, :] = jnp.broadcast_to(
        g_col, (g_col.shape[0], out_ref.shape[2])).astype(out_ref.dtype)


def _lcm(a, b):
    return a * b // math.gcd(a, b)


def _pick_tile_l(L, upscale, max_tile=512):
    """Largest tile that divides L, is a multiple of upscale (tiles align with conv steps) and
    of 128 (unmasked lane-dense stores), and is <= max_tile.  Falls back to a single full-width
    tile (block == full extent) when L is not a multiple of lcm(upscale, 128)."""
    unit = _lcm(upscale, 128)
    if L % unit != 0 or L <= unit:
        return L
    tile = unit
    while tile * 2 <= max_tile and L % (tile * 2) == 0:
        tile *= 2
    return tile


def _tile_interp_matrix(tile_t, upscale, pad_rows, dtype=jnp.float32):
    """(pad_rows, tile_t*upscale) matrix M with
       out[:, t*U + r] = c_prev[r]*h_ext[t] + c_mid[r]*h_ext[t+1] + c_next[r]*h_ext[t+2],
    i.e. 1-D linear interpolation (align_corners=False) on the clamp-extended signal.
    Rows >= tile_t + 2 are zero (padding for sublane-aligned slices)."""
    U = upscale
    r = jnp.arange(U, dtype=jnp.float32)
    frac = (r + 0.5) / U - 0.5                      # in (-0.5, 0.5)
    c_prev = jnp.maximum(-frac, 0.0)
    c_next = jnp.maximum(frac, 0.0)
    c_mid = 1.0 - c_prev - c_next
    t_idx = jnp.arange(tile_t)
    cols = t_idx[:, None] * U + jnp.arange(U)[None, :]          # (tile_t, U)
    m = jnp.zeros((pad_rows, tile_t * U), dtype)
    m = m.at[t_idx[:, None] + 0, cols].add(jnp.broadcast_to(c_prev, cols.shape))
    m = m.at[t_idx[:, None] + 1, cols].add(jnp.broadcast_to(c_mid, cols.shape))
    m = m.at[t_idx[:, None] + 2, cols].add(jnp.broadcast_to(c_next, cols.shape))
    return m


def condition_embed_forward(local_condition, global_condition, params, upscale_factor=64,
                            tile_l=None, out_dtype=jnp.float32):
    """local_condition: (B, Cin, T) float; global_condition: (B,) int32.
    Returns (B, local_emb_dim + global_emb_dim, upscale_factor * T), like the PyTorch module."""
    B, Cin, T = local_condition.shape
    L = upscale_factor * T
    conv_w, conv_b = params["conv_w"], params["conv_b"]
    emb = params["emb"]
    Clocal = conv_w[-1].shape[-1]
    Cg = emb.shape[-1]
    Ctot = Clocal + Cg

    if tile_l is None:
        tile_l = _pick_tile_l(L, upscale_factor)
    assert L % tile_l == 0 and tile_l % upscale_factor == 0, (L, tile_l, upscale_factor)
    tile_t = tile_l // upscale_factor
    n_tiles = L // tile_l
    pad_rows = -(-(tile_t + 2) // 8) * 8                       # sublane-aligned slice height
    scr_rows = (n_tiles - 1) * tile_t + pad_rows               # >= T + 2

    # ---- cheap input-side glue (inputs are ~64x smaller than the output) ----
    x = jnp.transpose(local_condition, (0, 2, 1)).astype(jnp.float32)     # (B, T, Cin)
    g = emb[global_condition].astype(jnp.float32)[..., None]              # (B, Cg, 1)

    # pack conv weights tap-major: (3, cin, cout) -> (3*cin, cout); stack layers 2..5
    w1 = conv_w[0].reshape(3 * Cin, Clocal)                               # (3*Cin, Cl)
    w_rest = jnp.stack([w.reshape(3 * Clocal, Clocal) for w in conv_w[1:]], axis=0)  # (4,3Cl,Cl)
    b_all = jnp.stack([b.reshape(1, Clocal) for b in conv_b], axis=0)     # (5, 1, Cl)

    # one tiny U-periodic interpolation matrix, shared by all tiles of all batch elements
    m_tile = _tile_interp_matrix(tile_t, upscale_factor, pad_rows)        # (pad_rows, tile_l)

    kernel = functools.partial(condition_embed_kernel, dilations=DILATIONS,
                               tile_t=tile_t, pad_rows=pad_rows)

    return pl.pallas_call(
        kernel,
        out_shape=jax.ShapeDtypeStruct((B, Ctot, L), out_dtype),
        grid_spec=pltpu.PrefetchScalarGridSpec(
            num_scalar_prefetch=0,
            grid=(B, n_tiles),
            in_specs=[
                pl.BlockSpec((1, T, Cin), lambda b, j: (b, 0, 0)),
                pl.BlockSpec(w1.shape, lambda b, j: (0, 0)),
                pl.BlockSpec(w_rest.shape, lambda b, j: (0, 0, 0)),
                pl.BlockSpec(b_all.shape, lambda b, j: (0, 0, 0)),
                pl.BlockSpec((1, Cg, 1), lambda b, j: (b, 0, 0)),
                pl.BlockSpec(m_tile.shape, lambda b, j: (0, 0)),
            ],
            out_specs=pl.BlockSpec((1, Ctot, tile_l), lambda b, j: (b, 0, j)),
            scratch_shapes=[pltpu.VMEM((scr_rows, Clocal), jnp.float32)],
        ),
        compiler_params=pltpu.CompilerParams(
            dimension_semantics=("parallel", "arbitrary"),
        ),
    )(x, w1, w_rest, b_all, g, m_tile)


def init_params(key, input_dim, num_global_cond, global_emb_dim, local_emb_dim):
    keys = jax.random.split(key, 11)
    dims = [(input_dim, local_emb_dim)] + [(local_emb_dim, local_emb_dim)] * 4
    conv_w, conv_b = [], []
    for i, (cin, cout) in enumerate(dims):
        bound = 1.0 / ((cin * 3) ** 0.5)                       # PyTorch Conv1d default init
        conv_w.append(jax.random.uniform(keys[2 * i], (3, cin, cout), jnp.float32, -bound, bound))
        conv_b.append(jax.random.uniform(keys[2 * i + 1], (1, cout), jnp.float32, -bound, bound))
    emb = jax.random.normal(keys[10], (num_global_cond, global_emb_dim), jnp.float32)
    return {"conv_w": conv_w, "conv_b": conv_b, "emb": emb}


# ----------------------------- plain-JAX reference ---------------------------------------------
def _linear_interp_matrix(T, L):
    """1-D linear interp (align_corners=False) as an (L, T) matrix (reference only)."""
    scale = T / L
    dst = jnp.arange(L, dtype=jnp.float32)
    src = jnp.maximum(scale * (dst + 0.5) - 0.5, 0.0)
    i0 = jnp.minimum(jnp.floor(src).astype(jnp.int32), T - 1)
    i1 = jnp.minimum(i0 + 1, T - 1)
    w1 = src - i0.astype(jnp.float32)
    w0 = 1.0 - w1
    m = jnp.zeros((L, T), jnp.float32)
    m = m.at[jnp.arange(L), i0].add(w0)
    m = m.at[jnp.arange(L), i1].add(w1)
    return m


def reference_forward(local_condition, global_condition, params, upscale_factor=64):
    """Plain-JAX reference mirroring the (intended) PyTorch forward."""
    x = local_condition.astype(jnp.float32)                    # (B, Cin, T)
    for i, (w, b, d) in enumerate(zip(params["conv_w"], params["conv_b"], DILATIONS)):
        w_oik = jnp.transpose(w, (2, 1, 0))                    # (Cout, Cin, 3)
        x = lax.conv_general_dilated(x, w_oik, window_strides=(1,), padding=[(d, d)],
                                     rhs_dilation=(d,),
                                     dimension_numbers=("NCH", "OIH", "NCH"),
                                     precision=lax.Precision.HIGHEST)
        x = x + b[0][None, :, None]
        if i < len(DILATIONS) - 1:
            x = jnp.maximum(x, 0.0)
    B, C, T = x.shape
    L = upscale_factor * T
    M = _linear_interp_matrix(T, L)
    local_up = jnp.einsum("lt,bct->bcl", M, x, precision=lax.Precision.HIGHEST)
    g = params["emb"][global_condition]                        # (B, Cg)
    g_up = jnp.broadcast_to(g[:, :, None], (B, g.shape[1], L))
    return jnp.concatenate([local_up, g_up], axis=1)


if __name__ == "__main__":
    key = jax.random.PRNGKey(0)
    input_dim = 4
    num_global_cond, global_emb_dim, local_emb_dim = 10, 16, 32
    upscale_factor = 64

    pkey, xkey, gkey, x2key, g2key = jax.random.split(key, 5)
    params = init_params(pkey, input_dim, num_global_cond, global_emb_dim, local_emb_dim)

    # Case 1: B=2, T=32 -> L=2048, auto tile_l=512 -> grid (2, 4).
    # Exercises multi-tile pipelining, the persistent conv scratch, and the d >= T skip path.
    B, T = 2, 32
    local_cond = jax.random.normal(xkey, (B, input_dim, T), jnp.float32)
    global_cond = jax.random.randint(gkey, (B,), 0, num_global_cond)
    out = jax.block_until_ready(
        condition_embed_forward(local_cond, global_cond, params, upscale_factor))
    assert out.shape == (B, local_emb_dim + global_emb_dim, upscale_factor * T), out.shape
    ref = reference_forward(local_cond, global_cond, params, upscale_factor)
    err = float(jnp.max(jnp.abs(out - ref)))
    assert err < 2e-3, f"case1 max abs err = {err}"

    # Case 2: B=1, odd T=7 -> L=448, single full-width tile fallback (block == full extent).
    T2 = 7
    local_cond2 = jax.random.normal(x2key, (1, input_dim, T2), jnp.float32)
    global_cond2 = jax.random.randint(g2key, (1,), 0, num_global_cond)
    out2 = jax.block_until_ready(
        condition_embed_forward(local_cond2, global_cond2, params, upscale_factor))
    ref2 = reference_forward(local_cond2, global_cond2, params, upscale_factor)
    err2 = float(jnp.max(jnp.abs(out2 - ref2)))
    assert err2 < 2e-3, f"case2 max abs err = {err2}"

    print("KERNEL_OK")
</pallas_src>

<mosaic_0001>
module attributes {stable_mosaic.version = 11 : i64} {
  func.func @condition_embed_kernel(%arg0: i32, %arg1: i32, %arg2: memref<1x32x4xf32, #tpu.memory_space<vmem>>, %arg3: memref<12x32xf32, #tpu.memory_space<vmem>>, %arg4: memref<4x96x32xf32, #tpu.memory_space<vmem>>, %arg5: memref<5x1x32xf32, #tpu.memory_space<vmem>>, %arg6: memref<1x16x1xf32, #tpu.memory_space<vmem>>, %arg7: memref<16x512xf32, #tpu.memory_space<vmem>>, %arg8: memref<1x48x512xf32, #tpu.memory_space<vmem>>, %arg9: memref<40x32xf32, #tpu.memory_space<vmem>>) attributes {dimension_semantics = [#tpu.dimension_semantics<parallel>, #tpu.dimension_semantics<arbitrary>], iteration_bounds = array<i64: 2, 4>, scalar_prefetch = 0 : i64, scratch_operands = 1 : i64, tpu.core_type = #tpu.core_type<tc>, window_params = [{transform_indices = @transform_0, window_bounds = array<i64: 1, 32, 4>}, {pipeline_mode = #tpu.pipeline_mode<synchronous>, transform_indices = @transform_1, window_bounds = array<i64: 12, 32>}, {pipeline_mode = #tpu.pipeline_mode<synchronous>, transform_indices = @transform_2, window_bounds = array<i64: 4, 96, 32>}, {pipeline_mode = #tpu.pipeline_mode<synchronous>, transform_indices = @transform_3, window_bounds = array<i64: 5, 1, 32>}, {transform_indices = @transform_4, window_bounds = array<i64: 1, 16, 1>}, {pipeline_mode = #tpu.pipeline_mode<synchronous>, transform_indices = @transform_5, window_bounds = array<i64: 16, 512>}, {transform_indices = @transform_6, window_bounds = array<i64: 1, 48, 512>}]} {
    %c0_i32 = arith.constant 0 : i32
    %0 = arith.cmpi eq, %arg1, %c0_i32 : i32
    %1 = arith.extui %0 : i1 to i32
    %c0_i32_0 = arith.constant 0 : i32
    %2 = arith.cmpi ne, %1, %c0_i32_0 : i32
    scf.if %2 {
      %c0_11 = arith.constant 0 : index
      %c0_12 = arith.constant 0 : index
      %c0_13 = arith.constant 0 : index
      %20 = vector.load %arg2[%c0_11, %c0_12, %c0_13] : memref<1x32x4xf32, #tpu.memory_space<vmem>>, vector<1x32x4xf32>
      %21 = vector.shape_cast %20 : vector<1x32x4xf32> to vector<32x4xf32>
      %c0_14 = arith.constant 0 : index
      %c0_15 = arith.constant 0 : index
      %22 = vector.load %arg3[%c0_14, %c0_15] : memref<12x32xf32, #tpu.memory_space<vmem>>, vector<12x32xf32>
      %cst_16 = arith.constant 0.000000e+00 : f32
      %23 = vector.broadcast %cst_16 : f32 to vector<1x4xf32>
      %24 = vector.extract_strided_slice %21 {offsets = [0, 0], sizes = [31, 4], strides = [1, 1]} : vector<32x4xf32> to vector<31x4xf32>
      %25 = tpu.concatenate %23, %24 in 0 : vector<1x4xf32>, vector<31x4xf32> -> vector<32x4xf32>
      %26 = vector.extract_strided_slice %21 {offsets = [1, 0], sizes = [31, 4], strides = [1, 1]} : vector<32x4xf32> to vector<31x4xf32>
      %cst_17 = arith.constant 0.000000e+00 : f32
      %27 = vector.broadcast %cst_17 : f32 to vector<1x4xf32>
      %28 = tpu.concatenate %26, %27 in 0 : vector<31x4xf32>, vector<1x4xf32> -> vector<32x4xf32>
      %29 = tpu.concatenate %25, %21, %28 in 1 : vector<32x4xf32>, vector<32x4xf32>, vector<32x4xf32> -> vector<32x12xf32>
      %cst_18 = arith.constant dense<0.000000e+00> : vector<32x32xf32>
      %30 = tpu.matmul %29, %22, %cst_18 {dimension_numbers = #tpu.dot_dimension_numbers<[1], [0], [0], [1], [0, 0, 1, 1], [], []>} : vector<32x12xf32>, vector<12x32xf32>, vector<32x32xf32> -> vector<32x32xf32>
      %c0_19 = arith.constant 0 : index
      %c0_20 = arith.constant 0 : index
      %c0_21 = arith.constant 0 : index
      %31 = vector.load %arg5[%c0_19, %c0_20, %c0_21] : memref<5x1x32xf32, #tpu.memory_space<vmem>>, vector<1x1x32xf32>
      %32 = vector.shape_cast %31 : vector<1x1x32xf32> to vector<1x32xf32>
      %33 = vector.broadcast %32 : vector<1x32xf32> to vector<32x32xf32>
      %34 = arith.addf %30, %33 : vector<32x32xf32>
      %cst_22 = arith.constant 0.000000e+00 : f32
      %35 = vector.broadcast %cst_22 : f32 to vector<32x32xf32>
      %36 = arith.maximumf %34, %35 : vector<32x32xf32>
      %c0_23 = arith.constant 0 : index
      %c0_24 = arith.constant 0 : index
      %c0_25 = arith.constant 0 : index
      %37 = vector.load %arg4[%c0_23, %c0_24, %c0_25] : memref<4x96x32xf32, #tpu.memory_space<vmem>>, vector<1x96x32xf32>
      %38 = vector.shape_cast %37 : vector<1x96x32xf32> to vector<96x32xf32>
      %cst_26 = arith.constant 0.000000e+00 : f32
      %39 = vector.broadcast %cst_26 : f32 to vector<2x32xf32>
      %40 = vector.extract_strided_slice %36 {offsets = [0, 0], sizes = [30, 32], strides = [1, 1]} : vector<32x32xf32> to vector<30x32xf32>
      %41 = tpu.concatenate %39, %40 in 0 : vector<2x32xf32>, vector<30x32xf32> -> vector<32x32xf32>
      %42 = vector.extract_strided_slice %36 {offsets = [2, 0], sizes = [30, 32], strides = [1, 1]} : vector<32x32xf32> to vector<30x32xf32>
      %cst_27 = arith.constant 0.000000e+00 : f32
      %43 = vector.broadcast %cst_27 : f32 to vector<2x32xf32>
      %44 = tpu.concatenate %42, %43 in 0 : vector<30x32xf32>, vector<2x32xf32> -> vector<32x32xf32>
      %45 = tpu.concatenate %41, %36, %44 in 1 : vector<32x32xf32>, vector<32x32xf32>, vector<32x32xf32> -> vector<32x96xf32>
      %cst_28 = arith.constant dense<0.000000e+00> : vector<32x32xf32>
      %46 = tpu.matmul %45, %38, %cst_28 {dimension_numbers = #tpu.dot_dimension_numbers<[1], [0], [0], [1], [0, 0, 1, 1], [], []>} : vector<32x96xf32>, vector<96x32xf32>, vector<32x32xf32> -> vector<32x32xf32>
      %c1 = arith.constant 1 : index
      %c0_29 = arith.constant 0 : index
      %c0_30 = arith.constant 0 : index
      %47 = vector.load %arg5[%c1, %c0_29, %c0_30] : memref<5x1x32xf32, #tpu.memory_space<vmem>>, vector<1x1x32xf32>
      %48 = vector.shape_cast %47 : vector<1x1x32xf32> to vector<1x32xf32>
      %49 = vector.broadcast %48 : vector<1x32xf32> to vector<32x32xf32>
      %50 = arith.addf %46, %49 : vector<32x32xf32>
      %cst_31 = arith.constant 0.000000e+00 : f32
      %51 = vector.broadcast %cst_31 : f32 to vector<32x32xf32>
      %52 = arith.maximumf %50, %51 : vector<32x32xf32>
      %c1_32 = arith.constant 1 : index
      %c0_33 = arith.constant 0 : index
      %c0_34 = arith.constant 0 : index
      %53 = vector.load %arg4[%c1_32, %c0_33, %c0_34] : memref<4x96x32xf32, #tpu.memory_space<vmem>>, vector<1x96x32xf32>
      %54 = vector.shape_cast %53 : vector<1x96x32xf32> to vector<96x32xf32>
      %cst_35 = arith.constant 0.000000e+00 : f32
      %55 = vector.broadcast %cst_35 : f32 to vector<4x32xf32>
      %56 = vector.extract_strided_slice %52 {offsets = [0, 0], sizes = [28, 32], strides = [1, 1]} : vector<32x32xf32> to vector<28x32xf32>
      %57 = tpu.concatenate %55, %56 in 0 : vector<4x32xf32>, vector<28x32xf32> -> vector<32x32xf32>
      %58 = vector.extract_strided_slice %52 {offsets = [4, 0], sizes = [28, 32], strides = [1, 1]} : vector<32x32xf32> to vector<28x32xf32>
      %cst_36 = arith.constant 0.000000e+00 : f32
      %59 = vector.broadcast %cst_36 : f32 to vector<4x32xf32>
      %60 = tpu.concatenate %58, %59 in 0 : vector<28x32xf32>, vector<4x32xf32> -> vector<32x32xf32>
      %61 = tpu.concatenate %57, %52, %60 in 1 : vector<32x32xf32>, vector<32x32xf32>, vector<32x32xf32> -> vector<32x96xf32>
      %cst_37 = arith.constant dense<0.000000e+00> : vector<32x32xf32>
      %62 = tpu.matmul %61, %54, %cst_37 {dimension_numbers = #tpu.dot_dimension_numbers<[1], [0], [0], [1], [0, 0, 1, 1], [], []>} : vector<32x96xf32>, vector<96x32xf32>, vector<32x32xf32> -> vector<32x32xf32>
      %c2 = arith.constant 2 : index
      %c0_38 = arith.constant 0 : index
      %c0_39 = arith.constant 0 : index
      %63 = vector.load %arg5[%c2, %c0_38, %c0_39] : memref<5x1x32xf32, #tpu.memory_space<vmem>>, vector<1x1x32xf32>
      %64 = vector.shape_cast %63 : vector<1x1x32xf32> to vector<1x32xf32>
      %65 = vector.broadcast %64 : vector<1x32xf32> to vector<32x32xf32>
      %66 = arith.addf %62, %65 : vector<32x32xf32>
      %cst_40 = arith.constant 0.000000e+00 : f32
      %67 = vector.broadcast %cst_40 : f32 to vector<32x32xf32>
      %68 = arith.maximumf %66, %67 : vector<32x32xf32>
      %c2_41 = arith.constant 2 : index
      %c0_42 = arith.constant 0 : index
      %c0_43 = arith.constant 0 : index
      %69 = vector.load %arg4[%c2_41, %c0_42, %c0_43] : memref<4x96x32xf32, #tpu.memory_space<vmem>>, vector<1x96x32xf32>
      %70 = vector.shape_cast %69 : vector<1x96x32xf32> to vector<96x32xf32>
      %cst_44 = arith.constant 0.000000e+00 : f32
      %71 = vector.broadcast %cst_44 : f32 to vector<8x32xf32>
      %72 = vector.extract_strided_slice %68 {offsets = [0, 0], sizes = [24, 32], strides = [1, 1]} : vector<32x32xf32> to vector<24x32xf32>
      %73 = tpu.concatenate %71, %72 in 0 : vector<8x32xf32>, vector<24x32xf32> -> vector<32x32xf32>
      %74 = vector.extract_strided_slice %68 {offsets = [8, 0], sizes = [24, 32], strides = [1, 1]} : vector<32x32xf32> to vector<24x32xf32>
      %cst_45 = arith.constant 0.000000e+00 : f32
      %75 = vector.broadcast %cst_45 : f32 to vector<8x32xf32>
      %76 = tpu.concatenate %74, %75 in 0 : vector<24x32xf32>, vector<8x32xf32> -> vector<32x32xf32>
      %77 = tpu.concatenate %73, %68, %76 in 1 : vector<32x32xf32>, vector<32x32xf32>, vector<32x32xf32> -> vector<32x96xf32>
      %cst_46 = arith.constant dense<0.000000e+00> : vector<32x32xf32>
      %78 = tpu.matmul %77, %70, %cst_46 {dimension_numbers = #tpu.dot_dimension_numbers<[1], [0], [0], [1], [0, 0, 1, 1], [], []>} : vector<32x96xf32>, vector<96x32xf32>, vector<32x32xf32> -> vector<32x32xf32>
      %c3 = arith.constant 3 : index
      %c0_47 = arith.constant 0 : index
      %c0_48 = arith.constant 0 : index
      %79 = vector.load %arg5[%c3, %c0_47, %c0_48] : memref<5x1x32xf32, #tpu.memory_space<vmem>>, vector<1x1x32xf32>
      %80 = vector.shape_cast %79 : vector<1x1x32xf32> to vector<1x32xf32>
      %81 = vector.broadcast %80 : vector<1x32xf32> to vector<32x32xf32>
      %82 = arith.addf %78, %81 : vector<32x32xf32>
      %cst_49 = arith.constant 0.000000e+00 : f32
      %83 = vector.broadcast %cst_49 : f32 to vector<32x32xf32>
      %84 = arith.maximumf %82, %83 : vector<32x32xf32>
      %c3_50 = arith.constant 3 : index
      %c0_51 = arith.constant 0 : index
      %c0_52 = arith.constant 0 : index
      %85 = vector.load %arg4[%c3_50, %c0_51, %c0_52] : memref<4x96x32xf32, #tpu.memory_space<vmem>>, vector<1x96x32xf32>
      %86 = vector.shape_cast %85 : vector<1x96x32xf32> to vector<96x32xf32>
      %cst_53 = arith.constant 0.000000e+00 : f32
      %87 = vector.broadcast %cst_53 : f32 to vector<16x32xf32>
      %88 = vector.extract_strided_slice %84 {offsets = [0, 0], sizes = [16, 32], strides = [1, 1]} : vector<32x32xf32> to vector<16x32xf32>
      %89 = tpu.concatenate %87, %88 in 0 : vector<16x32xf32>, vector<16x32xf32> -> vector<32x32xf32>
      %90 = vector.extract_strided_slice %84 {offsets = [16, 0], sizes = [16, 32], strides = [1, 1]} : vector<32x32xf32> to vector<16x32xf32>
      %cst_54 = arith.constant 0.000000e+00 : f32
      %91 = vector.broadcast %cst_54 : f32 to vector<16x32xf32>
      %92 = tpu.concatenate %90, %91 in 0 : vector<16x32xf32>, vector<16x32xf32> -> vector<32x32xf32>
      %93 = tpu.concatenate %89, %84, %92 in 1 : vector<32x32xf32>, vector<32x32xf32>, vector<32x32xf32> -> vector<32x96xf32>
      %cst_55 = arith.constant dense<0.000000e+00> : vector<32x32xf32>
      %94 = tpu.matmul %93, %86, %cst_55 {dimension_numbers = #tpu.dot_dimension_numbers<[1], [0], [0], [1], [0, 0, 1, 1], [], []>} : vector<32x96xf32>, vector<96x32xf32>, vector<32x32xf32> -> vector<32x32xf32>
      %c4 = arith.constant 4 : index
      %c0_56 = arith.constant 0 : index
      %c0_57 = arith.constant 0 : index
      %95 = vector.load %arg5[%c4, %c0_56, %c0_57] : memref<5x1x32xf32, #tpu.memory_space<vmem>>, vector<1x1x32xf32>
      %96 = vector.shape_cast %95 : vector<1x1x32xf32> to vector<1x32xf32>
      %97 = vector.broadcast %96 : vector<1x32xf32> to vector<32x32xf32>
      %98 = arith.addf %94, %97 : vector<32x32xf32>
      %99 = vector.extract_strided_slice %98 {offsets = [0, 0], sizes = [1, 32], strides = [1, 1]} : vector<32x32xf32> to vector<1x32xf32>
      %100 = vector.extract_strided_slice %98 {offsets = [31, 0], sizes = [1, 32], strides = [1, 1]} : vector<32x32xf32> to vector<1x32xf32>
      %101 = tpu.concatenate %99, %98, %100 in 0 : vector<1x32xf32>, vector<32x32xf32>, vector<1x32xf32> -> vector<34x32xf32>
      %cst_58 = arith.constant 0.000000e+00 : f32
      %102 = vector.broadcast %cst_58 : f32 to vector<6x32xf32>
      %103 = tpu.concatenate %101, %102 in 0 : vector<34x32xf32>, vector<6x32xf32> -> vector<40x32xf32>
      %c0_59 = arith.constant 0 : index
      %c0_60 = arith.constant 0 : index
      %104 = vector.load %arg9[%c0_59, %c0_60] : memref<40x32xf32, #tpu.memory_space<vmem>>, vector<40x32xf32>
      tpu.vector_store %arg9[%c0_59, %c0_60], %103 {strides = array<i32>} : memref<40x32xf32, #tpu.memory_space<vmem>>, vector<40x32xf32>,
    } else {
    }
    %c8_i32 = arith.constant 8 : i32
    %3 = arith.muli %arg1, %c8_i32 : i32
    %4 = tpu.assume_multiple %3, 8 : i32
    %5 = arith.index_cast %4 : i32 to index
    %c0 = arith.constant 0 : index
    %6 = vector.load %arg9[%5, %c0] : memref<40x32xf32, #tpu.memory_space<vmem>>, vector<16x32xf32>
    %7 = tpu.transpose %6, [1, 0] : vector<16x32xf32> -> vector<32x16xf32>
    %c0_1 = arith.constant 0 : index
    %c0_2 = arith.constant 0 : index
    %8 = vector.load %arg7[%c0_1, %c0_2] : memref<16x512xf32, #tpu.memory_space<vmem>>, vector<16x512xf32>
    %cst = arith.constant dense<0.000000e+00> : vector<32x512xf32>
    %9 = tpu.matmul %7, %8, %cst {dimension_numbers = #tpu.dot_dimension_numbers<[1], [0], [0], [1], [0, 0, 1, 1], [], []>} : vector<32x16xf32>, vector<16x512xf32>, vector<32x512xf32> -> vector<32x512xf32>
    %c0_3 = arith.constant 0 : index
    %c0_4 = arith.constant 0 : index
    %c0_5 = arith.constant 0 : index
    %10 = vector.load %arg8[%c0_3, %c0_4, %c0_5] : memref<1x48x512xf32, #tpu.memory_space<vmem>>, vector<1x32x512xf32>
    %11 = vector.shape_cast %10 : vector<1x32x512xf32> to vector<32x512xf32>
    %12 = vector.shape_cast %9 : vector<32x512xf32> to vector<1x32x512xf32>
    tpu.vector_store %arg8[%c0_3, %c0_4, %c0_5], %12 {strides = array<i32>} : memref<1x48x512xf32, #tpu.memory_space<vmem>>, vector<1x32x512xf32>,
    %c0_6 = arith.constant 0 : index
    %c0_7 = arith.constant 0 : index
    %c0_8 = arith.constant 0 : index
    %13 = vector.load %arg6[%c0_6, %c0_7, %c0_8] : memref<1x16x1xf32, #tpu.memory_space<vmem>>, vector<1x16x1xf32>
    %14 = vector.shape_cast %13 : vector<1x16x1xf32> to vector<16x1xf32>
    %15 = vector.shape_cast %14 : vector<16x1xf32> to vector<16x1xf32>
    %16 = vector.broadcast %15 : vector<16x1xf32> to vector<16x512xf32>
    %c0_9 = arith.constant 0 : index
    %c32 = arith.constant 32 : index
    %c0_10 = arith.constant 0 : index
    %17 = vector.load %arg8[%c0_9, %c32, %c0_10] : memref<1x48x512xf32, #tpu.memory_space<vmem>>, vector<1x16x512xf32>
    %18 = vector.shape_cast %17 : vector<1x16x512xf32> to vector<16x512xf32>
    %19 = vector.shape_cast %16 : vector<16x512xf32> to vector<1x16x512xf32>
    tpu.vector_store %arg8[%c0_9, %c32, %c0_10], %19 {strides = array<i32>} : memref<1x48x512xf32, #tpu.memory_space<vmem>>, vector<1x16x512xf32>,
    return
  }
  func.func @transform_0(%arg0: i32, %arg1: i32) -> (i32, i32, i32) {
    %c0_i32 = arith.constant 0 : i32
    %c0_i32_0 = arith.constant 0 : i32
    %c0_i32_1 = arith.constant 0 : i32
    return %arg0, %c0_i32, %c0_i32_0 : i32, i32, i32
  }
  func.func @transform_1(%arg0: i32, %arg1: i32) -> (i32, i32) {
    %c0_i32 = arith.constant 0 : i32
    %c0_i32_0 = arith.constant 0 : i32
    %c0_i32_1 = arith.constant 0 : i32
    return %c0_i32, %c0_i32_0 : i32, i32
  }
  func.func @transform_2(%arg0: i32, %arg1: i32) -> (i32, i32, i32) {
    %c0_i32 = arith.constant 0 : i32
    %c0_i32_0 = arith.constant 0 : i32
    %c0_i32_1 = arith.constant 0 : i32
    %c0_i32_2 = arith.constant 0 : i32
    return %c0_i32, %c0_i32_0, %c0_i32_1 : i32, i32, i32
  }
  func.func @transform_3(%arg0: i32, %arg1: i32) -> (i32, i32, i32) {
    %c0_i32 = arith.constant 0 : i32
    %c0_i32_0 = arith.constant 0 : i32
    %c0_i32_1 = arith.constant 0 : i32
    %c0_i32_2 = arith.constant 0 : i32
    return %c0_i32, %c0_i32_0, %c0_i32_1 : i32, i32, i32
  }
  func.func @transform_4(%arg0: i32, %arg1: i32) -> (i32, i32, i32) {
    %c0_i32 = arith.constant 0 : i32
    %c0_i32_0 = arith.constant 0 : i32
    %c0_i32_1 = arith.constant 0 : i32
    return %arg0, %c0_i32, %c0_i32_0 : i32, i32, i32
  }
  func.func @transform_5(%arg0: i32, %arg1: i32) -> (i32, i32) {
    %c0_i32 = arith.constant 0 : i32
    %c0_i32_0 = arith.constant 0 : i32
    %c0_i32_1 = arith.constant 0 : i32
    return %c0_i32, %c0_i32_0 : i32, i32
  }
  func.func @transform_6(%arg0: i32, %arg1: i32) -> (i32, i32, i32) {
    %c0_i32 = arith.constant 0 : i32
    %c0_i32_0 = arith.constant 0 : i32
    return %arg0, %c0_i32, %arg1 : i32, i32, i32
  }
}

</mosaic_0001>

<bundles_post_ra>
// kernel: tpu_custom_call.1
= control target key start
LH: loop header
LB: loop body
LE: loop exit
PB: predicated region body
PF: predicated region fallthrough
CT: control target
= control target key end

     0   :  { %s2674_s0 = inlined_call_operand.vmem [shape: f32[2,32,4], index: 0, kind: input, shape index: {}]   ;;  %s2675_s1 = inlined_call_operand.vmem [shape: f32[12,32], index: 1, kind: input, shape index: {}]   ;;  %s2676_s2 = inlined_call_operand.vmem [shape: f32[4,96,32], index: 2, kind: input, shape index: {}]   ;;  %s2677_s3 = inlined_call_operand.vmem [shape: f32[5,1,32], index: 3, kind: input, shape index: {}]   ;;  %s2678_s4 = inlined_call_operand.vmem [shape: f32[2,16,1], index: 4, kind: input, shape index: {}]   ;;  %s2679_s5 = inlined_call_operand.vmem [shape: f32[16,512], index: 5, kind: input, shape index: {}]   ;;  %s2680_s6 = inlined_call_operand.hbm [shape: f32[2,48,2048], index: 6, kind: output, shape index: {}]  }
   0x1   :  { %2687 = sst [smem:[#allocation7_spill]] %s2674_s0 }
   0x2   :  { %2688 = sst [smem:[#allocation8_spill]] %s2675_s1 }
   0x3   :  { %11 = vsyncpa [#allocation4], 0 }
   0x4   :  { %13 = vsyncpa [#allocation4 + $0x1], 0  ;;  %s2167_s21 = smov 0   ;;  %s2169_s22 = smov 0  }
   0x5   :  { %s2171_s23 = smov 0   ;;  %s2173_s24 = smov 0  }
   0x6   :  { %s2175_s25 = smov 0   ;;  %s2177_s26 = smov 0  }
   0x7   :  { %s2179_s27 = smov 0   ;;  %s2181_s28 = smov 0  }
   0x8 LB: > { %s1537_s29 = sadd.s32 4294967295, %s2118_s28   ;;  %s1538_s30 = sadd.s32 4294967294, %s2118_s28   ;;  %s2118_s28 = sphi %s2181_s28, %s19_s28   ;;  %s2114_s27 = sphi %s2179_s27, %s2704_s27   ;;  %s2110_s26 = sphi %s2177_s26, %s2703_s26   ;;  %s2106_s25 = sphi %s2175_s25, %s2702_s25   ;;  %s2102_s24 = sphi %s2173_s24, %s2701_s24   ;;  %s2098_s23 = sphi %s2171_s23, %s2700_s23   ;;  %s2094_s22 = sphi %s2169_s22, %s2699_s22   ;;  %s2090_s21 = sphi %s2167_s21, %s2698_s21  }
   0x9   : > { %s28_s7 = sadd.s32 1, %s2110_s26  ;;  %s31_s8 = sadd.s32 1, %s2114_s27 }
   0xa   : > { %p29_p0 = scmp.ge.s32.totalorder %s28_s7, 4  ;;  %p186_p1 = scmp.ne.s32.totalorder %s2098_s23, %s2094_s22 }
   0xb   : > { %p187_p2 = scmp.eq.s32.totalorder %s1537_s29, 7  ;;  %p192_p5 = scmp.ne.s32.totalorder %s2094_s22, %s2090_s21 }
   0xc   : > { %s2706_s7 = smov (%p29_p0, %s28_s7), 0  ;;  %s2708_s8 = smov (!%p29_p0, %s31_s8), %s2114_s27 }
   0xd   : > { %s172_s9 = ssub.s32 %s2110_s26, %s2706_s7  ;;  %p2218_p3 = por %p187_p2, %p186_p1 }
   0xe   : > { %p33_p4 = scmp.ge.s32.totalorder %s2708_s8, 2  ;;  %p193_p6 = scmp.eq.s32.totalorder %s1538_s30, 7 }
   0xf   : > { %p1541_p7 = scmp.ge.s32.totalorder %s2118_s28, 1  ;;  %p239_p9 = scmp.lt.s32.totalorder %s2118_s28, 9 }
  0x10   : > { %s2710_s8 = smov (%p33_p4, %s2708_s8), 0  ;;  %p2227_p8 = por %p193_p6, %p192_p5 }
  0x11   : > { %2690 = sst [smem:[#allocation6_spill]] %s2710_s8  ;;  %s171_s12 = ssub.s32 %s2114_s27, %s2710_s8 }
  0x12   : > { %s176_s13 = sadd.s32 1, %s2098_s23  ;;  %s173_s14 = sor.u32 %s172_s9, %s171_s12 }
  0x13   : > { %p240_p10 = pnand %p1541_p7, %p239_p9  ;;  %p174_p11 = scmp.eq.s32.totalorder %s173_s14, 0 }
  0x14   : > { %s2682_s16 = sand.u32 (!%p240_p10), 1, %s2094_s22   ;;  %p274_p12 = scmp.lt.s32.totalorder (!%p240_p10), %s2106_s25, 1 }
  0x15   : > { %s2236_s15 = scalar_select %p174_p11, %s2098_s23, %s176_s13  }
  0x16   : > { %243 = sbr.rel (%p240_p10) target bundleno = 2123 (0x84b), region = 44  ;;  %s2692_s0 = sld [smem:[#allocation7_spill]] (!%p240_p10) }
  0x17   : > { %s1938_s17 = smul.u32 (!%p240_p10), 192, %s2682_s16  ;;  %p1546_p13 = scmp.ne.s32.totalorder (!%p240_p10), %s2102_s24, 0 }
  0x19   : > { %s2251_s8 = scalar_lea.vmem (!%p240_p10), [#allocation3], %s1938_s17 }
  0x1d   : > { %s275_s18 = scalar_select %p274_p12, %s2106_s25, 1 }
  0x1e   : > { %288 = sbr.rel (%p1546_p13) target bundleno = 1746 (0x6d2), region = 48  ;;  %vm312_vm0 = vcmask (!%p1546_p13), 1046528   ;;  %s2120_s16 = smov (!%p1546_p13), 4   ;;  %vm299_vm1 = vcmask (!%p1546_p13), 1040384   ;;  %vm377_vm2 = vcmask (!%p1546_p13), 1043456   ;;  %vm2122_vm3 = vmmov (!%p1546_p13), 1  }
  0x1f   : > { %s1626_s19 = sshll.u32 %s275_s18, 5  ;;  %s1627_s20 = sshll.u32 %s275_s18, 4  ;;  %vm1829_vm4 = vmpackc.low (!%p1546_p13), %vm377_vm2, %vm2122_vm3  ;;  %vm347_vm5 = vcmask (!%p1546_p13), 31744   ;;  %vm352_vm6 = vcmask (!%p1546_p13), 64512   ;;  %vm364_vm7 = vcmask (!%p1546_p13), 97280   ;;  %v470_v39 = vld [vmem:[%s2676_s2] sm:$0xff] (!%p1546_p13) }
  0x20   : > { %s278_s9 = scalar_lea.vmem %s2692_s0, %s1626_s19  ;;  %s2249_s13 = scalar_lea.vmem %s2678_s4, %s1627_s20  ;;  %v471_v40 = vld [vmem:[%s2676_s2 + $0x8] sm:$0xff] (!%p1546_p13)  ;;  %v472_v41 = vld [vmem:[%s2676_s2 + $0x10] sm:$0xff] (!%p1546_p13)  ;;  %v473_v43 = vld [vmem:[%s2676_s2 + $0x18] sm:$0xff] (!%p1546_p13)  ;;  %vm499_vm8 = vcmask (!%p1546_p13), 1045504   ;;  %vm486_vm9 = vcmask (!%p1546_p13), 1041408   ;;  %vm534_vm10 = vcmask (!%p1546_p13), 261120  }
  0x21   : > { %v289_v0 = vld [vmem:[%s278_s9] sm:$0xff] (!%p1546_p13)  ;;  %v290_v1 = vld [vmem:[%s278_s9 + $0x8] sm:$0xff] (!%p1546_p13)  ;;  %v291_v2 = vld [vmem:[%s278_s9 + $0x10] sm:$0xff] (!%p1546_p13)  ;;  %s2693_s1 = sld [smem:[#allocation8_spill]] (!%p1546_p13)  ;;  %s2121_s29 = smov (!%p1546_p13), 8   ;;  %v1834_v42 = vpack.c.bf16 (!%p1546_p13), %v471_v40, %v470_v39  ;;  %v1838_v44 = vpack.c.bf16 (!%p1546_p13), %v473_v43, %v472_v41  ;;  %vm539_vm11 = vcmask (!%p1546_p13), 523264  }
  0x22   : > { %322 = vrot.lane.b32.xlu0 (!%p1546_p13), %v289_v0, %s2120_s16  ;;  %v313_v3 = vrot.slane (!%p1546_p13), %v289_v0, 1  ;;  %v314_v4 = vrot.slane (!%p1546_p13), %v290_v1, 1  ;;  %v316_v5 = vrot.slane (!%p1546_p13), %v291_v2, 1  ;;  %v300_v8 = vrot.slane (!%p1546_p13), %v289_v0, 7  ;;  %v292_v10 = vld [vmem:[%s278_s9 + $0x18] sm:$0xff] (!%p1546_p13)  ;;  %v474_v45 = vld [vmem:[%s2676_s2 + $0x20] sm:$0xff] (!%p1546_p13) }
  0x23   : > { %v301_v11 = vrot.slane (!%p1546_p13), %v290_v1, 7  ;;  %v305_v12 = vrot.slane (!%p1546_p13), %v292_v10, 7  ;;  %v318_v16 = vrot.slane (!%p1546_p13), %v292_v10, 1  ;;  %v303_v17 = vrot.slane (!%p1546_p13), %v291_v2, 7  ;;  %v475_v46 = vld [vmem:[%s2676_s2 + $0x28] sm:$0xff] (!%p1546_p13)  ;;  %1835 = vmatprep.subr.bf16.mxu1 (!%p1546_p13), %v1834_v42  ;;  %v476_v48 = vld [vmem:[%s2676_s2 + $0x30] sm:$0xff] (!%p1546_p13) }
  0x24   : > { %v315_v9 = vsel (!%p1546_p13), %vm312_vm0, %v313_v3, %v314_v4  ;;  %v317_v14 = vsel (!%p1546_p13), %vm312_vm0, %v314_v4, %v316_v5  ;;  %v311_v22 = vsel (!%p1546_p13), %vm299_vm1, 0.0, %v300_v8  ;;  %1837 = vmatpush3.bf16.msra.mxu1 (!%p1546_p13), %v1834_v42  ;;  %v1842_v47 = vpack.c.bf16 (!%p1546_p13), %v475_v46, %v474_v45  ;;  %v477_v49 = vld [vmem:[%s2676_s2 + $0x38] sm:$0xff] (!%p1546_p13)  ;;  %v478_v51 = vld [vmem:[%s2676_s2 + $0x40] sm:$0xff] (!%p1546_p13)  ;;  %v479_v52 = vld [vmem:[%s2676_s2 + $0x48] sm:$0xff] (!%p1546_p13)  ;;  %s2685_s19 = smov (!%p1546_p13), 32   ;;  %s2683_s20 = smov (!%p1546_p13), 64  }
  0x25   : > { %335 = vrot.lane.b32.xlu1 %v315_v9, %s2121_s29  ;;  %v302_v15 = vsel %vm299_vm1, %v300_v8, %v301_v11  ;;  %v304_v18 = vsel %vm299_vm1, %v301_v11, %v303_v17  ;;  %v306_v19 = vsel %vm299_vm1, %v303_v17, %v305_v12  ;;  %v319_v20 = vsel %vm312_vm0, %v316_v5, %v318_v16  ;;  %v1547_v54 = vld [vmem:[%s2677_s3] ss:$0 sm:$0xff]  ;;  %v480_v55 = vld [vmem:[%s2676_s2 + $0x50] sm:$0xff]  ;;  %v481_v56 = vld [vmem:[%s2676_s2 + $0x58] sm:$0xff] }
  0x26   : > { %324 = vrot.lane.b32.xlu0 %v290_v1, %s2120_s16  ;;  %v321_v21 = vsel %vm312_vm0, %v318_v16, 0.0  ;;  %1839 = vmatprep.subr.bf16.mxu1 %v1838_v44  ;;  %v1846_v50 = vpack.c.bf16 %v477_v49, %v476_v48  ;;  %v1850_v53 = vpack.c.bf16 %v479_v52, %v478_v51  ;;  %v1854_v57 = vpack.c.bf16 %v481_v56, %v480_v55  ;;  %v1560_v39 = vld [vmem:[%s2676_s2 + $0x68] sm:$0xff]  ;;  %v1561_v40 = vld [vmem:[%s2676_s2 + $0x70] sm:$0xff]  ;;  %v1562_v42 = vld [vmem:[%s2676_s2 + $0x78] sm:$0xff] }
  0x27   : > { %v293_v6 = vld [vmem:[%s2693_s1] sm:$0xff]  ;;  %v294_v7 = vld [vmem:[%s2693_s1 + $0x8] sm:$0xf]  ;;  %vm552_vm12 = vcmask 785408   ;;  %v1862_v43 = vpack.c.bf16 %v1562_v42, %v1561_v40  ;;  %v1566_v48 = vld [vmem:[%s2676_s2 + $0x98] sm:$0xff] }
  0x28   : > { %v1828_v13 = vpack.c.bf16 %v294_v7, %v293_v6  ;;  %1841 = vmatpush3.bf16.msra.mxu1 %v1838_v44  ;;  %v1563_v44 = vld [vmem:[%s2676_s2 + $0x80] sm:$0xff]  ;;  %v1564_v45 = vld [vmem:[%s2676_s2 + $0x88] sm:$0xff]  ;;  %v1584_v40 = vld [vmem:[%s2676_s2 + $0xf8] sm:$0xff] }
  0x29   : > { %337 = vrot.lane.b32.xlu1 %v317_v14, %s2121_s29  ;;  %1843 = vmatprep.subr.bf16.mxu1 %v1842_v47  ;;  %v1866_v46 = vpack.c.bf16 %v1564_v45, %v1563_v44  ;;  %v1568_v51 = vld [vmem:[%s2676_s2 + $0xa8] sm:$0xff]  ;;  %v1554_v56 = vld [vmem:[%s2677_s3 + $0x1] ss:$0 sm:$0xff]  ;;  %v1587_v45 = vld [vmem:[%s2676_s2 + $0x110] sm:$0xff] }
  0x2a   : > { %1830 = vmatprep.subr.msk.bf16.mxu0 %vm1829_vm4, %v1828_v13  ;;  %326 = vrot.lane.b32.xlu0 %v291_v2, %s2120_s16  ;;  %v1585_v42 = vld [vmem:[%s2676_s2 + $0x100] sm:$0xff] }
  0x2b   : > { %1833 = vmatpush3.bf16.msk.msra.mxu0 %vm1829_vm4, %v1828_v13 }
  0x2c   : > { %1845 = vmatpush3.bf16.msra.mxu1 %v1842_v47  ;;  %v1565_v47 = vld [vmem:[%s2676_s2 + $0x90] sm:$0xff] }
  0x2d   : > { %328 = vrot.lane.b32.xlu1 %v292_v10, %s2120_s16  ;;  %1847 = vmatprep.subr.bf16.mxu1 %v1846_v50  ;;  %v1870_v49 = vpack.c.bf16 %v1566_v48, %v1565_v47  ;;  %v1572_v48 = vld [vmem:[%s2677_s3 + $0x2] ss:$0 sm:$0xff] }
  0x2e   : > { %339 = vrot.lane.b32.xlu0 %v319_v20, %s2121_s29 }
  0x30   : > { %1849 = vmatpush3.bf16.msra.mxu1 %v1846_v50  ;;  %v1567_v50 = vld [vmem:[%s2676_s2 + $0xa0] sm:$0xff] }
  0x31   : > { %341 = vrot.lane.b32.xlu1 %v321_v21, %s2121_s29  ;;  %1851 = vmatprep.subr.bf16.mxu1 %v1850_v53  ;;  %v1874_v52 = vpack.c.bf16 %v1568_v51, %v1567_v50 }
  0x34   : > { %1853 = vmatpush3.bf16.msra.mxu1 %v1850_v53  ;;  %v1569_v53 = vld [vmem:[%s2676_s2 + $0xb0] sm:$0xff] }
  0x35   : > { %1855 = vmatprep.subr.bf16.mxu1 %v1854_v57 }
  0x38   : > { %1857 = vmatpush3.bf16.msra.mxu1 %v1854_v57 }
  0x94   : > { %v323_v23 = vpop.permute.xlu0 %322 }
  0x95   : > { %v348_v24 = vsel %vm347_vm5, %v311_v22, %v323_v23 }
  0x97   : > { %v336_v25 = vpop.permute.xlu1 %335 }
  0x98   : > { %v325_v26 = vpop.permute.xlu0 %324  ;;  %v353_v27 = vsel %vm352_vm6, %v348_v24, %v336_v25 }
  0x99   : > { %v349_v28 = vsel %vm347_vm5, %v302_v15, %v325_v26  ;;  %1702 = vmatprep.mubr.msk.f32.mxu0 %vm364_vm7, %v353_v27 }
  0x9b   : > { %v338_v29 = vpop.permute.xlu1 %337 }
  0x9c   : > { %v354_v30 = vsel %vm352_vm6, %v349_v28, %v338_v29  ;;  %v327_v31 = vpop.permute.xlu0 %326 }
  0x9d   : > { %1703 = vmatmul.mubr.msk.f32.vlgmr.msra.gmra.mrb[0].mxu0 %vm364_vm7, %v354_v30  ;;  %v350_v32 = vsel %vm347_vm5, %v304_v18, %v327_v31 }
  0x9f   : > { %v329_v33 = vpop.permute.xlu1 %328 }
  0xa0   : > { %v340_v34 = vpop.permute.xlu0 %339  ;;  %v351_v36 = vsel %vm347_vm5, %v306_v19, %v329_v33 }
  0xa1   : > { %v355_v35 = vsel %vm352_vm6, %v350_v32, %v340_v34 }
  0xa2   : > { %1705 = vmatprep.mubr.msk.f32.mxu0 %vm364_vm7, %v355_v35 }
  0xa3   : > { %v342_v37 = vpop.permute.xlu1 %341 }
  0xa4   : > { %v356_v38 = vsel %vm352_vm6, %v351_v36, %v342_v37 }
  0xa5   : > { %1706 = vmatmul.mubr.msk.f32.gmra.mrb[2].mxu0 %vm364_vm7, %v356_v38  ;;  %v1559_v38 = vld [vmem:[%s2676_s2 + $0x60] sm:$0xff] }
  0xa6   : > { %v1858_v41 = vpack.c.bf16 %v1560_v39, %v1559_v38  ;;  %v1583_v39 = vld [vmem:[%s2676_s2 + $0xf0] sm:$0xff] }
  0xa8   : > { %1859 = vmatprep.subr.bf16.mxu0 %v1858_v41 }
  0xa9   : > { %1861 = vmatpush3.bf16.msra.mxu0 %v1858_v41  ;;  %v1894_v41 = vpack.c.bf16 %v1584_v40, %v1583_v39 }
  0xaa   : > { %1863 = vmatprep.subr.bf16.mxu0 %v1862_v43 }
  0xad   : > { %1865 = vmatpush3.bf16.msra.mxu0 %v1862_v43  ;;  %v1586_v43 = vld [vmem:[%s2676_s2 + $0x108] sm:$0xff] }
  0xae   : > { %1867 = vmatprep.subr.bf16.mxu0 %v1866_v46  ;;  %v1898_v44 = vpack.c.bf16 %v1586_v43, %v1585_v42 }
  0xb1   : > { %1869 = vmatpush3.bf16.msra.mxu0 %v1866_v46  ;;  %v1588_v46 = vld [vmem:[%s2676_s2 + $0x118] sm:$0xff] }
  0xb2   : > { %1871 = vmatprep.subr.bf16.mxu0 %v1870_v49  ;;  %v1902_v47 = vpack.c.bf16 %v1588_v46, %v1587_v45 }
  0xb5   : > { %1873 = vmatpush3.bf16.msra.mxu0 %v1870_v49 }
  0xb6   : > { %1875 = vmatprep.subr.bf16.mxu0 %v1874_v52 }
  0xb9   : > { %1877 = vmatpush3.bf16.msra.mxu0 %v1874_v52 }
 0x170   : > { %v1704_v58 = vpop.f32.mrb[0].mxu0 }
 0x171   : > { %v453_v59 = vadd.f32 %v1704_v58, %v1547_v54  ;;  %v447_v60 = vpop.f32.mrb[1].mxu0 }
 0x172   : > { %v448_v61 = vadd.f32 %v1547_v54, %v447_v60 }
 0x173   : > { %v467_v62 = vmax.f32 %v453_v59, 0.0 }
 0x174   : > { %v466_v63 = vmax.f32 %v448_v61, 0.0 }
 0x175   : > { %v488_v0 = vrot.slane %v467_v62, 6  ;;  %v501_v1 = vrot.slane %v467_v62, 2  ;;  %511 = vrot.lane.b32.xlu1 %v467_v62, %s2685_s19 }
 0x176   : > { %v487_v2 = vrot.slane %v466_v63, 6  ;;  %v500_v3 = vrot.slane %v466_v63, 2  ;;  %509 = vrot.lane.b32.xlu0 %v466_v63, %s2685_s19 }
 0x178   : > { %v1707_v4 = vpop.f32.mrb[2].mxu0  ;;  %v502_v5 = vsel %vm499_vm8, %v500_v3, %v501_v1  ;;  %v489_v6 = vsel %vm486_vm9, %v487_v2, %v488_v0  ;;  %v498_v23 = vsel %vm486_vm9, 0.0, %v487_v2 }
 0x179   : > { %v463_v7 = vadd.f32 %v1707_v4, %v1547_v54  ;;  %v457_v8 = vpop.f32.mrb[3].mxu0 }
 0x17a   : > { %v458_v9 = vadd.f32 %v1547_v54, %v457_v8  ;;  %522 = vrot.lane.b32.xlu0 %v502_v5, %s2683_s20  ;;  %v1570_v54 = vld [vmem:[%s2676_s2 + $0xb8] sm:$0xff] }
 0x17b   : > { %v469_v10 = vmax.f32 %v463_v7, 0.0  ;;  %v1878_v55 = vpack.c.bf16 %v1570_v54, %v1569_v53 }
 0x17c   : > { %v468_v11 = vmax.f32 %v458_v9, 0.0 }
 0x17d   : > { %v492_v12 = vrot.slane %v469_v10, 6  ;;  %v505_v13 = vrot.slane %v469_v10, 2  ;;  %515 = vrot.lane.b32.xlu1 %v469_v10, %s2685_s19  ;;  %1879 = vmatprep.subr.bf16.mxu0 %v1878_v55 }
 0x17e   : > { %v490_v14 = vrot.slane %v468_v11, 6  ;;  %v503_v15 = vrot.slane %v468_v11, 2  ;;  %513 = vrot.lane.b32.xlu0 %v468_v11, %s2685_s19  ;;  %1881 = vmatpush3.bf16.msra.mxu0 %v1878_v55  ;;  %s2694_s19 = smov 32  }
 0x17f   : > { %v508_v20 = vsel %vm499_vm8, %v505_v13, 0.0 }
 0x180   : > { %v504_v16 = vsel %vm499_vm8, %v501_v1, %v503_v15  ;;  %v506_v17 = vsel %vm499_vm8, %v503_v15, %v505_v13  ;;  %v493_v18 = vsel %vm486_vm9, %v490_v14, %v492_v12  ;;  %v491_v19 = vsel %vm486_vm9, %v488_v0, %v490_v14 }
 0x181   : > { %524 = vrot.lane.b32.xlu1 %v504_v16, %s2683_s20 }
 0x182   : > { %526 = vrot.lane.b32.xlu0 %v506_v17, %s2683_s20 }
 0x185   : > { %528 = vrot.lane.b32.xlu1 %v508_v20, %s2683_s20  ;;  %s2695_s20 = smov 64  }
 0x1e7   : > { %v512_v22 = vpop.permute.xlu1 %511 }
 0x1e8   : > { %v510_v21 = vpop.permute.xlu0 %509  ;;  %v536_v29 = vsel %vm534_vm10, %v489_v6, %v512_v22 }
 0x1e9   : > { %v535_v24 = vsel %vm534_vm10, %v498_v23, %v510_v21 }
 0x1ec   : > { %v523_v25 = vpop.permute.xlu0 %522 }
 0x1ed   : > { %v540_v26 = vsel %vm539_vm11, %v535_v24, %v523_v25 }
 0x1ee   : > { %1732 = vmatprep.mubr.msk.f32.mxu1 %vm552_vm12, %v540_v26 }
 0x1ef   : > { %v516_v27 = vpop.permute.xlu1 %515 }
 0x1f0   : > { %v514_v28 = vpop.permute.xlu0 %513  ;;  %v538_v35 = vsel %vm534_vm10, %v493_v18, %v516_v27 }
 0x1f1   : > { %v537_v31 = vsel %vm534_vm10, %v491_v19, %v514_v28 }
 0x1f3   : > { %v525_v30 = vpop.permute.xlu1 %524 }
 0x1f4   : > { %v541_v32 = vsel %vm539_vm11, %v536_v29, %v525_v30  ;;  %v527_v33 = vpop.permute.xlu0 %526  ;;  %v1577_v30 = vld [vmem:[%s2676_s2 + $0xc0] sm:$0xff] }
 0x1f5   : > { %v542_v34 = vsel %vm539_vm11, %v537_v31, %v527_v33  ;;  %1733 = vmatmul.mubr.msk.f32.vlgmr.msra.gmra.mrb[0].mxu1 %vm552_vm12, %v541_v32  ;;  %v1578_v31 = vld [vmem:[%s2676_s2 + $0xc8] sm:$0xff]  ;;  %v1579_v32 = vld [vmem:[%s2676_s2 + $0xd0] sm:$0xff] }
 0x1f6   : > { %1735 = vmatprep.mubr.msk.f32.mxu1 %vm552_vm12, %v542_v34  ;;  %v1882_v33 = vpack.c.bf16 %v1578_v31, %v1577_v30  ;;  %v1580_v34 = vld [vmem:[%s2676_s2 + $0xd8] sm:$0xff] }
 0x1f7   : > { %v529_v36 = vpop.permute.xlu1 %528  ;;  %v1606_v30 = vld [vmem:[%s2676_s2 + $0x178] sm:$0xff] }
 0x1f8   : > { %v543_v37 = vsel %vm539_vm11, %v538_v35, %v529_v36  ;;  %v1886_v35 = vpack.c.bf16 %v1580_v34, %v1579_v32  ;;  %v1581_v36 = vld [vmem:[%s2676_s2 + $0xe0] sm:$0xff]  ;;  %1883 = vmatprep.subr.bf16.mxu1 %v1882_v33 }
 0x1f9   : > { %1736 = vmatmul.mubr.msk.f32.gmra.mrb[2].mxu1 %vm552_vm12, %v543_v37  ;;  %v1582_v37 = vld [vmem:[%s2676_s2 + $0xe8] sm:$0xff]  ;;  %v1590_v32 = vld [vmem:[%s2677_s3 + $0x3] ss:$0 sm:$0xff] }
 0x1fa   : > { %1885 = vmatpush3.bf16.msra.mxu1 %v1882_v33  ;;  %v1890_v38 = vpack.c.bf16 %v1582_v37, %v1581_v36 }
 0x1fb   : > { %1887 = vmatprep.subr.bf16.mxu1 %v1886_v35 }
 0x1fe   : > { %1889 = vmatpush3.bf16.msra.mxu1 %v1886_v35 }
 0x1ff   : > { %1891 = vmatprep.subr.bf16.mxu1 %v1890_v38 }
 0x202   : > { %1893 = vmatpush3.bf16.msra.mxu1 %v1890_v38 }
 0x203   : > { %1895 = vmatprep.subr.bf16.mxu1 %v1894_v41 }
 0x206   : > { %1897 = vmatpush3.bf16.msra.mxu1 %v1894_v41 }
 0x207   : > { %1899 = vmatprep.subr.bf16.mxu1 %v1898_v44 }
 0x20a   : > { %1901 = vmatpush3.bf16.msra.mxu1 %v1898_v44 }
 0x20b   : > { %1903 = vmatprep.subr.bf16.mxu1 %v1902_v47 }
 0x20e   : > { %1905 = vmatpush3.bf16.msra.mxu1 %v1902_v47 }
 0x2c8   : > { %v1734_v57 = vpop.f32.mrb[0].mxu1 }
 0x2c9   : > { %v637_v58 = vadd.f32 %v1734_v57, %v1554_v56  ;;  %v631_v59 = vpop.f32.mrb[1].mxu1 }
 0x2ca   : > { %v632_v60 = vadd.f32 %v1554_v56, %v631_v59 }
 0x2cb   : > { %v651_v61 = vmax.f32 %v637_v58, 0.0 }
 0x2cc   : > { %v650_v62 = vmax.f32 %v632_v60, 0.0  ;;  %v1737_v63 = vpop.f32.mrb[2].mxu1 }
 0x2cd   : > { %v672_v0 = vrot.slane %v651_v61, 4  ;;  %v647_v1 = vadd.f32 %v1737_v63, %v1554_v56  ;;  %687 = vrot.lane.b32.xlu1 %v651_v61, %s2694_s19  ;;  %v641_v2 = vpop.f32.mrb[3].mxu1  ;;  %v2125_v61 = vmov 0.0  }
 0x2ce   : > { %v671_v3 = vrot.slane %v650_v62, 4  ;;  %v642_v4 = vadd.f32 %v1554_v56, %v641_v2  ;;  %685 = vrot.lane.b32.xlu0 %v650_v62, %s2694_s19 }
 0x2cf   : > { %v653_v5 = vmax.f32 %v647_v1, 0.0 }
 0x2d0   : > { %v652_v6 = vmax.f32 %v642_v4, 0.0  ;;  %v673_v7 = vsel %vm377_vm2, %v671_v3, %v672_v0  ;;  %v682_v15 = vsel %vm377_vm2, 0.0, %v671_v3 }
 0x2d1   : > { %v676_v8 = vrot.slane %v653_v5, 4  ;;  %691 = vrot.lane.b32.xlu1 %v653_v5, %s2694_s19 }
 0x2d2   : > { %v674_v9 = vrot.slane %v652_v6, 4  ;;  %698 = vrot.lane.b32.xlu0 %v673_v7, %s2695_s20 }
 0x2d3   : > { %v684_v12 = vsel %vm377_vm2, %v676_v8, 0.0 }
 0x2d4   : > { %v675_v10 = vsel %vm377_vm2, %v672_v0, %v674_v9  ;;  %v677_v11 = vsel %vm377_vm2, %v674_v9, %v676_v8 }
 0x2d5   : > { %700 = vrot.lane.b32.xlu1 %v675_v10, %s2695_s20 }
 0x2d6   : > { %689 = vrot.lane.b32.xlu0 %v652_v6, %s2694_s19 }
 0x2d9   : > { %704 = vrot.lane.b32.xlu1 %v684_v12, %s2695_s20 }
 0x2da   : > { %702 = vrot.lane.b32.xlu0 %v677_v11, %s2695_s20 }
 0x33f   : > { %v688_v13 = vpop.permute.xlu1 %687 }
 0x340   : > { %v686_v14 = vpop.permute.xlu0 %685  ;;  %v711_v20 = vsel %vm534_vm10, %v673_v7, %v688_v13 }
 0x341   : > { %v710_v17 = vsel %vm534_vm10, %v682_v15, %v686_v14  ;;  %v1595_v14 = vld [vmem:[%s2676_s2 + $0x120] sm:$0xff]  ;;  %v1596_v15 = vld [vmem:[%s2676_s2 + $0x128] sm:$0xff] }
 0x343   : > { %v692_v16 = vpop.permute.xlu1 %691 }
 0x344   : > { %v699_v18 = vpop.permute.xlu0 %698  ;;  %v713_v27 = vsel %vm534_vm10, %v677_v11, %v692_v16  ;;  %v1597_v16 = vld [vmem:[%s2676_s2 + $0x130] sm:$0xff] }
 0x345   : > { %v714_v19 = vsel %vm539_vm11, %v710_v17, %v699_v18  ;;  %v1906_v17 = vpack.c.bf16 %v1596_v15, %v1595_v14  ;;  %v1598_v18 = vld [vmem:[%s2676_s2 + $0x138] sm:$0xff] }
 0x346   : > { %1762 = vmatprep.mubr.msk.f32.mxu0 %vm552_vm12, %v714_v19  ;;  %v1910_v19 = vpack.c.bf16 %v1598_v18, %v1597_v16 }
 0x347   : > { %v701_v21 = vpop.permute.xlu1 %700  ;;  %1907 = vmatprep.subr.bf16.mxu0 %v1906_v17 }
 0x348   : > { %v715_v22 = vsel %vm539_vm11, %v711_v20, %v701_v21  ;;  %v690_v23 = vpop.permute.xlu0 %689  ;;  %v1599_v20 = vld [vmem:[%s2676_s2 + $0x140] sm:$0xff]  ;;  %v1600_v21 = vld [vmem:[%s2676_s2 + $0x148] sm:$0xff] }
 0x349   : > { %1763 = vmatmul.mubr.msk.f32.vlgmr.msra.gmra.mrb[4].mxu0 %vm552_vm12, %v715_v22  ;;  %v712_v25 = vsel %vm534_vm10, %v675_v10, %v690_v23  ;;  %v1914_v22 = vpack.c.bf16 %v1600_v21, %v1599_v20  ;;  %v1601_v23 = vld [vmem:[%s2676_s2 + $0x150] sm:$0xff] }
 0x34a   : > { %1909 = vmatpush3.bf16.msra.mxu0 %v1906_v17 }
 0x34b   : > { %v705_v24 = vpop.permute.xlu1 %704  ;;  %1911 = vmatprep.subr.bf16.mxu0 %v1910_v19 }
 0x34c   : > { %v703_v26 = vpop.permute.xlu0 %702  ;;  %v717_v29 = vsel %vm539_vm11, %v713_v27, %v705_v24  ;;  %v1602_v24 = vld [vmem:[%s2676_s2 + $0x158] sm:$0xff]  ;;  %v1604_v27 = vld [vmem:[%s2676_s2 + $0x168] sm:$0xff] }
 0x34d   : > { %v716_v28 = vsel %vm539_vm11, %v712_v25, %v703_v26  ;;  %v1918_v25 = vpack.c.bf16 %v1602_v24, %v1601_v23  ;;  %v1603_v26 = vld [vmem:[%s2676_s2 + $0x160] sm:$0xff] }
 0x34e   : > { %1765 = vmatprep.mubr.msk.f32.mxu0 %vm552_vm12, %v716_v28  ;;  %1913 = vmatpush3.bf16.msra.mxu0 %v1910_v19  ;;  %v1922_v28 = vpack.c.bf16 %v1604_v27, %v1603_v26 }
 0x34f   : > { %1766 = vmatmul.mubr.msk.f32.gmra.mrb[6].mxu0 %vm552_vm12, %v717_v29  ;;  %1915 = vmatprep.subr.bf16.mxu0 %v1914_v22  ;;  %v1605_v29 = vld [vmem:[%s2676_s2 + $0x170] sm:$0xff] }
 0x350   : > { %v1926_v31 = vpack.c.bf16 %v1606_v30, %v1605_v29 }
 0x352   : > { %1917 = vmatpush3.bf16.msra.mxu0 %v1914_v22 }
 0x353   : > { %1919 = vmatprep.subr.bf16.mxu0 %v1918_v25 }
 0x356   : > { %1921 = vmatpush3.bf16.msra.mxu0 %v1918_v25 }
 0x357   : > { %1923 = vmatprep.subr.bf16.mxu0 %v1922_v28 }
 0x35a   : > { %1925 = vmatpush3.bf16.msra.mxu0 %v1922_v28 }
 0x35b   : > { %1927 = vmatprep.subr.bf16.mxu0 %v1926_v31 }
 0x35e   : > { %1929 = vmatpush3.bf16.msra.mxu0 %v1926_v31 }
 0x41c   : > { %v1764_v49 = vpop.f32.mrb[4].mxu0 }
 0x41d   : > { %v810_v50 = vadd.f32 %v1764_v49, %v1572_v48  ;;  %v804_v51 = vpop.f32.mrb[5].mxu0 }
 0x41e   : > { %v805_v53 = vadd.f32 %v1572_v48, %v804_v51 }
 0x41f   : > { %v824_v52 = vmax.f32 %v810_v50, 0.0 }
 0x420   : > { %v823_v55 = vmax.f32 %v805_v53, 0.0 }
 0x421   : > { %857 = vrot.lane.b32.xlu0 %v824_v52, %s2695_s20  ;;  %846 = vrot.lane.b32.xlu1 %v824_v52, %s2694_s19 }
 0x422   : > { %v1767_v54 = vpop.f32.mrb[6].mxu0 }
 0x423   : > { %v820_v56 = vadd.f32 %v1767_v54, %v1572_v48  ;;  %v814_v57 = vpop.f32.mrb[7].mxu0 }
 0x424   : > { %v815_v58 = vadd.f32 %v1572_v48, %v814_v57 }
 0x425   : > { %v826_v59 = vmax.f32 %v820_v56, 0.0  ;;  %844 = vrot.lane.b32.xlu0 %v823_v55, %s2694_s19 }
 0x426   : > { %v825_v60 = vmax.f32 %v815_v58, 0.0 }
 0x427   : > { %850 = vrot.lane.b32.xlu1 %v826_v59, %s2694_s19 }
 0x429   : > { %848 = vrot.lane.b32.xlu0 %v825_v60, %s2694_s19 }
 0x42b   : > { %859 = vrot.lane.b32.xlu1 %v825_v60, %s2695_s20 }
 0x42d   : > { %861 = vrot.lane.b32.xlu0 %v826_v59, %s2695_s20  ;;  %v1608_v59 = vld [vmem:[%s2677_s3 + $0x4] ss:$0 sm:$0xff] }
 0x42f   : > { %863 = vrot.lane.b32.xlu1 %v2125_v61, %s2695_s20 }
 0x493   : > { %v858_v62 = vpop.permute.xlu0 %857  ;;  %v847_v63 = vpop.permute.xlu1 %846 }
 0x494   : > { %v870_v5 = vsel %vm534_vm10, %v823_v55, %v847_v63 }
 0x497   : > { %v845_v0 = vpop.permute.xlu0 %844 }
 0x498   : > { %v869_v1 = vsel %vm534_vm10, 0.0, %v845_v0 }
 0x499   : > { %v873_v2 = vsel %vm539_vm11, %v869_v1, %v858_v62  ;;  %v851_v3 = vpop.permute.xlu1 %850 }
 0x49a   : > { %1792 = vmatprep.mubr.msk.f32.mxu1 %vm552_vm12, %v873_v2  ;;  %v872_v11 = vsel %vm534_vm10, %v825_v60, %v851_v3 }
 0x49b   : > { %v849_v4 = vpop.permute.xlu0 %848 }
 0x49c   : > { %v871_v8 = vsel %vm534_vm10, %v824_v52, %v849_v4 }
 0x49d   : > { %v860_v6 = vpop.permute.xlu1 %859 }
 0x49e   : > { %v874_v7 = vsel %vm539_vm11, %v870_v5, %v860_v6 }
 0x49f   : > { %v862_v9 = vpop.permute.xlu0 %861  ;;  %1793 = vmatmul.mubr.msk.f32.vlgmr.msra.gmra.mrb[4].mxu1 %vm552_vm12, %v874_v7 }
 0x4a0   : > { %v875_v10 = vsel %vm539_vm11, %v871_v8, %v862_v9 }
 0x4a1   : > { %v2472_v12 = vpop.permute.xlu1 %863  ;;  %1795 = vmatprep.mubr.msk.f32.mxu1 %vm552_vm12, %v875_v10 }
 0x4a2   : > { %v876_v13 = vsel %vm539_vm11, %v872_v11, %v2472_v12 }
 0x4a3   : > { %1796 = vmatmul.mubr.msk.f32.gmra.mrb[6].mxu1 %vm552_vm12, %v876_v13 }
 0x572   : > { %v1794_v33 = vpop.f32.mrb[4].mxu1 }
 0x573   : > { %v969_v34 = vadd.f32 %v1794_v33, %v1590_v32  ;;  %v963_v35 = vpop.f32.mrb[5].mxu1 }
 0x574   : > { %v964_v36 = vadd.f32 %v1590_v32, %v963_v35 }
 0x575   : > { %v983_v37 = vmax.f32 %v969_v34, 0.0 }
 0x576   : > { %v982_v38 = vmax.f32 %v964_v36, 0.0  ;;  %v1797_v39 = vpop.f32.mrb[6].mxu1 }
 0x577   : > { %v979_v40 = vadd.f32 %v1797_v39, %v1590_v32  ;;  %1005 = vrot.lane.b32.xlu1 %v983_v37, %s2694_s19  ;;  %v973_v41 = vpop.f32.mrb[7].mxu1 }
 0x578   : > { %v974_v42 = vadd.f32 %v1590_v32, %v973_v41  ;;  %1003 = vrot.lane.b32.xlu0 %v982_v38, %s2694_s19 }
 0x579   : > { %v985_v43 = vmax.f32 %v979_v40, 0.0 }
 0x57a   : > { %v984_v44 = vmax.f32 %v974_v42, 0.0 }
 0x57b   : > { %1017 = vrot.lane.b32.xlu1 %v985_v43, %s2695_s20 }
 0x57c   : > { %1015 = vrot.lane.b32.xlu0 %v984_v44, %s2695_s20 }
 0x57f   : > { %1009 = vrot.lane.b32.xlu1 %v985_v43, %s2694_s19 }
 0x580   : > { %1007 = vrot.lane.b32.xlu0 %v984_v44, %s2694_s19 }
 0x5e9   : > { %v1006_v45 = vpop.permute.xlu1 %1005 }
 0x5ea   : > { %v1004_v46 = vpop.permute.xlu0 %1003  ;;  %v1022_v50 = vsel %vm534_vm10, 0.0, %v1006_v45 }
 0x5eb   : > { %v1021_v48 = vsel %vm534_vm10, 0.0, %v1004_v46 }
 0x5ed   : > { %v1018_v47 = vpop.permute.xlu1 %1017 }
 0x5ee   : > { %v1016_v49 = vpop.permute.xlu0 %1015  ;;  %v1026_v52 = vsel %vm539_vm11, %v1022_v50, %v1018_v47 }
 0x5ef   : > { %v1025_v51 = vsel %vm539_vm11, %v1021_v48, %v1016_v49 }
 0x5f0   : > { %1822 = vmatprep.mubr.msk.f32.mxu0 %vm552_vm12, %v1025_v51 }
 0x5f1   : > { %v1010_v53 = vpop.permute.xlu1 %1009  ;;  %1823 = vmatmul.mubr.msk.f32.vlgmr.msra.gmra.mrb[8].mxu0 %vm552_vm12, %v1026_v52 }
 0x5f2   : > { %v1024_v54 = vsel %vm534_vm10, %v983_v37, %v1010_v53  ;;  %v1008_v55 = vpop.permute.xlu0 %1007 }
 0x5f3   : > { %v1023_v56 = vsel %vm534_vm10, %v982_v38, %v1008_v55  ;;  %v1028_v58 = vsel %vm539_vm11, %v1024_v54, %v2472_v12 }
 0x5f4   : > { %v1027_v57 = vsel %vm539_vm11, %v1023_v56, %v2472_v12 }
 0x5f5   : > { %1825 = vmatprep.mubr.msk.f32.mxu0 %vm552_vm12, %v1027_v57 }
 0x5f6   : > { %1826 = vmatmul.mubr.msk.f32.gmra.mrb[10].mxu0 %vm552_vm12, %v1028_v58 }
 0x6c4   : > { %v1824_v60 = vpop.f32.mrb[8].mxu0 }
 0x6c5   : > { %v1121_v61 = vadd.f32 %v1824_v60, %v1608_v59  ;;  %v1115_v62 = vpop.f32.mrb[9].mxu0 }
 0x6c6   : > { %v1116_v63 = vadd.f32 %v1608_v59, %v1115_v62 }
 0x6c7   : > { %v1139_v0 = vrot.slane %v1121_v61, 7 }
 0x6c8   : > { %v1138_v1 = vrot.slane %v1116_v63, 7 }
 0x6c9   : > { %v1827_v2 = vpop.f32.mrb[10].mxu0 }
 0x6ca   : > { %v1140_v3 = vsel %vm299_vm1, %v1138_v1, %v1139_v0  ;;  %v1152_v4 = vsel %vm299_vm1, %v1116_v63, %v1138_v1  ;;  %v1131_v5 = vadd.f32 %v1827_v2, %v1608_v59  ;;  %v1125_v6 = vpop.f32.mrb[11].mxu0 }
 0x6cb   : > { %1155 = vst.msk [vmem:[#allocation2] sm:$0xff] %vm534_vm10, %v1152_v4  ;;  %1156 = vst.msk [vmem:[#allocation2 + $0x8] sm:$0xff] %vm534_vm10, %v1140_v3  ;;  %v1126_v7 = vadd.f32 %v1608_v59, %v1125_v6 }
 0x6cc   : > { %v1143_v8 = vrot.slane %v1131_v5, 7  ;;  %v1150_v9 = vrot.slane %v1131_v5, 6 }
 0x6cd   : > { %v1141_v10 = vrot.slane %v1126_v7, 7 }
 0x6ce   : > { %v1153_v11 = vsel %vm299_vm1, %v1143_v8, %v1150_v9 }
 0x6cf   : > { %v1154_v12 = vsel %vm486_vm9, %v1153_v11, 0.0  ;;  %v1142_v13 = vsel %vm299_vm1, %v1139_v0, %v1141_v10  ;;  %v1144_v14 = vsel %vm299_vm1, %v1141_v10, %v1143_v8 }
 0x6d0   : > { %1159 = vst.msk [vmem:[#allocation2 + $0x20] sm:$0xff] %vm534_vm10, %v1154_v12  ;;  %1157 = vst.msk [vmem:[#allocation2 + $0x10] sm:$0xff] %vm534_vm10, %v1142_v13 }
 0x6d1   : > { %1158 = vst.msk [vmem:[#allocation2 + $0x18] sm:$0xff] %vm534_vm10, %v1144_v14 }
 0x6d2 PF: > { %s1613_s17 = sshll.u32 %s2102_s24, 3  ;;  %v1197_v15 = vld [vmem:[%s2679_s5 + $0x8] sm:$0xff]  ;;  %v1199_v17 = vld [vmem:[%s2679_s5 + $0x18] sm:$0xff]  ;;  %v1196_v20 = vld [vmem:[%s2679_s5] sm:$0xff]  ;;  %v2126_v22 = vmov 0.0   ;;  %v2127_v31 = vmov 0  }
 0x6d3   : > { %v1201_v16 = vld [vmem:[%s2679_s5 + $0x28] sm:$0xff]  ;;  %v1203_v19 = vld [vmem:[%s2679_s5 + $0x38] sm:$0xff]  ;;  %v1200_v21 = vld [vmem:[%s2679_s5 + $0x20] sm:$0xff]  ;;  %1281 = vmatprep.mubr.f32.mxu0 %v2126_v22  ;;  %1370 = vmatprep.mubr.f32.mxu1 %v2126_v22  ;;  %s1161_s16 = scalar_lea.vmem [#allocation2], %s1613_s17  ;;  %vm1204_vm13 = vcmask 130048   ;;  %s1622_s17 = sshll.u32 %s2102_s24, 2 }
 0x6d4   : > { %v1930_v18 = vpack.c.bf16 %v1201_v16, %v1197_v15  ;;  %v1934_v24 = vpack.c.bf16 %v1203_v19, %v1199_v17  ;;  %v1932_v25 = vpack.c.bf16 %v1200_v21, %v1196_v20  ;;  %v1198_v26 = vld [vmem:[%s2679_s5 + $0x10] sm:$0xff]  ;;  %v1411_v30 = vld [vmem:[%s2249_s13] sm:$0xff]  ;;  %2022 = vset.pattern.permute.xlu1 %v2127_v31  ;;  %v1412_v32 = vld [vmem:[%s2249_s13 + $0x8] sm:$0xff]  ;;  %s1939_s13 = smul.u32 96, %s2106_s25  ;;  %s1447_s24 = sshll.u32 %s2251_s8, 4  ;;  %s2614_s24 = int_to_ptr.vmem [resolvable:$true] %s1447_s24 }
 0x6d5   : > { %v1202_v27 = vld [vmem:[%s2679_s5 + $0x30] sm:$0xff]  ;;  %1415 = vperm.xlu1 %2022, %v1411_v30   ;;  %s2696_s20 = sand.u32 1, %s2094_s22   ;;  %s2128_s30 = smov [#allocation3]  }
 0x6d6   : > { %1931 = vmatprep.subr.bf16.mxu0 %v1930_v18  ;;  %1935 = vmatprep.subr.bf16.mxu1 %v1934_v24  ;;  %v1936_v29 = vpack.c.bf16 %v1202_v27, %v1198_v26  ;;  %s1444_s12 = sadd.s32 %s1939_s13, %s1622_s17  ;;  %s2622_s29 = scalar_lea.sflag [#allocation4], %s2696_s20 }
 0x6d7   : > { %1933 = vmatpush1.bf16.msra.mxu0 %v1932_v25  ;;  %s1623_s25 = sshll.u32 %s1444_s12, 7  ;;  %s2028_s0 = sshll.u32 %s2128_s30, 4  ;;  %s2029_s0 = int_to_ptr.vmem [resolvable:$false] %s2028_s0 }
 0x6d8   : > { %v1162_v23 = vld [vmem:[%s1161_s16] sm:$0xff]  ;;  %v1163_v28 = vld [vmem:[%s1161_s16 + $0x8] sm:$0xff]  ;;  %1937 = vmatpush1.bf16.msra.mxu1 %v1936_v29  ;;  %s2612_s19 = scalar_lea.hbm %s2680_s6, %s1623_s25  ;;  %s2024_s16 = scalar_lea.vmem %s2614_s24, 3072 }
 0x6d9   : > { %1164 = vxpose.xlu0.b32.start [1/2] (short) (narrow) %v1162_v23, 32  ;;  %1420 = vperm.xlu1 %2022, %v1412_v32   ;;  %p2025_p0 = scmp.ne.s32.totalorder %s2614_s24, %s2024_s16  ;;  %s2030_s1 = scalar_lea.vmem %s2029_s0, 6144 }
 0x6da   : > { %p2031_p4 = scmp.lt.s32.totalorder %s2614_s24, %s2029_s0  ;;  %p2032_p5 = scmp.lt.s32.totalorder %s2030_s1, %s2024_s16 }
 0x6db   : > { %p2026_p1 = pnand %p2025_p0, %p2218_p3 }
 0x6dc   : > { %p2033_p6 = por %p2032_p5, %p2031_p4 }
 0x6dd   : > { %1165 = vxpose.xlu0.b32.end [2/2] (short) (narrow) %v1163_v28, 32  ;;  %p2027_p2 = pneg %p2026_p1 }
 0x6df   : > { %p2034_p7 = pnand %p2033_p6, %p2027_p2 }
 0x706   : > { %2023 = vset.pattern.permute.xlu0 %v2127_v31 }
 0x754   : > { %v1416_v37 = vpop.permute.xlu1 %1415 }
 0x755   : > { %1423 = vst [vmem:[%s2251_s8 + $0x80] sm:$0xff] %v1416_v37  ;;  %1424 = vst [vmem:[%s2251_s8 + $0x88] sm:$0xff] %v1416_v37 }
 0x756   : > { %1425 = vst [vmem:[%s2251_s8 + $0x90] sm:$0xff] %v1416_v37  ;;  %1426 = vst [vmem:[%s2251_s8 + $0x98] sm:$0xff] %v1416_v37 }
 0x758   : > { %v1421_v38 = vpop.permute.xlu1 %1420 }
 0x759   : > { %v1180_v33 = vpop.trf.xlu0  ;;  %1427 = vst [vmem:[%s2251_s8 + $0xa0] sm:$0xff] %v1421_v38  ;;  %1428 = vst [vmem:[%s2251_s8 + $0xa8] sm:$0xff] %v1421_v38 }
 0x75a   : > { %1614 = vmatmul.mubr.msk.f32.vlgmr.msra.gmra.mrb[0].mxu0 %vm1204_vm13, %v1180_v33  ;;  %1618 = vmatmul.mubr.msk.f32.vlgmr.msra.gmra.mrb[0].mxu1 %vm1204_vm13, %v1180_v33  ;;  %1429 = vst [vmem:[%s2251_s8 + $0xb0] sm:$0xff] %v1421_v38  ;;  %1430 = vst [vmem:[%s2251_s8 + $0xb8] sm:$0xff] %v1421_v38 }
 0x75b   : > { %1287 = vmatprep.mubr.f32.mxu0 %v2126_v22  ;;  %1376 = vmatprep.mubr.f32.mxu1 %v2126_v22 }
 0x75d   : > { %v1181_v34 = vpop.trf.xlu0 }
 0x75e   : > { %1615 = vmatmul.mubr.msk.f32.gmra.mrb[2].mxu0 %vm1204_vm13, %v1181_v34  ;;  %1619 = vmatmul.mubr.msk.f32.gmra.mrb[2].mxu1 %vm1204_vm13, %v1181_v34 }
 0x75f   : > { %1293 = vmatprep.mubr.f32.mxu0 %v2126_v22  ;;  %1382 = vmatprep.mubr.f32.mxu1 %v2126_v22 }
 0x761   : > { %v1182_v35 = vpop.trf.xlu0 }
 0x762   : > { %1616 = vmatmul.mubr.msk.f32.gmra.mrb[4].mxu0 %vm1204_vm13, %v1182_v35  ;;  %1620 = vmatmul.mubr.msk.f32.gmra.mrb[4].mxu1 %vm1204_vm13, %v1182_v35 }
 0x763   : > { %1299 = vmatprep.mubr.f32.mxu0 %v2126_v22  ;;  %1388 = vmatprep.mubr.f32.mxu1 %v2126_v22 }
 0x765   : > { %v1183_v36 = vpop.trf.xlu0 }
 0x766   : > { %1617 = vmatmul.mubr.msk.f32.gmra.mrb[6].mxu0 %vm1204_vm13, %v1183_v36  ;;  %1621 = vmatmul.mubr.msk.f32.gmra.mrb[6].mxu1 %vm1204_vm13, %v1183_v36 }
 0x82d   : > { %v1283_v39 = vpop.f32.mrb[0].mxu0  ;;  %v1372_v40 = vpop.f32.mrb[0].mxu1 }
 0x82e   : > { %1395 = vst [vmem:[%s2251_s8] sm:$0xff] %v1283_v39  ;;  %1397 = vst [vmem:[%s2251_s8 + $0x10] sm:$0xff] %v1372_v40  ;;  %v1285_v41 = vpop.f32.mrb[1].mxu0  ;;  %v1374_v42 = vpop.f32.mrb[1].mxu1 }
 0x82f   : > { %1396 = vst [vmem:[%s2251_s8 + $0x8] sm:$0xff] %v1285_v41  ;;  %1398 = vst [vmem:[%s2251_s8 + $0x18] sm:$0xff] %v1374_v42 }
 0x831   : > { %v1289_v43 = vpop.f32.mrb[2].mxu0  ;;  %v1378_v44 = vpop.f32.mrb[2].mxu1 }
 0x832   : > { %1399 = vst [vmem:[%s2251_s8 + $0x20] sm:$0xff] %v1289_v43  ;;  %1401 = vst [vmem:[%s2251_s8 + $0x30] sm:$0xff] %v1378_v44  ;;  %v1291_v45 = vpop.f32.mrb[3].mxu0  ;;  %v1380_v46 = vpop.f32.mrb[3].mxu1 }
 0x833   : > { %1400 = vst [vmem:[%s2251_s8 + $0x28] sm:$0xff] %v1291_v45  ;;  %1402 = vst [vmem:[%s2251_s8 + $0x38] sm:$0xff] %v1380_v46 }
 0x835   : > { %v1295_v47 = vpop.f32.mrb[4].mxu0  ;;  %v1384_v48 = vpop.f32.mrb[4].mxu1 }
 0x836   : > { %1403 = vst [vmem:[%s2251_s8 + $0x40] sm:$0xff] %v1295_v47  ;;  %1405 = vst [vmem:[%s2251_s8 + $0x50] sm:$0xff] %v1384_v48  ;;  %v1297_v49 = vpop.f32.mrb[5].mxu0  ;;  %v1386_v50 = vpop.f32.mrb[5].mxu1 }
 0x837   : > { %1404 = vst [vmem:[%s2251_s8 + $0x48] sm:$0xff] %v1297_v49  ;;  %1406 = vst [vmem:[%s2251_s8 + $0x58] sm:$0xff] %v1386_v50 }
 0x839   : > { %v1301_v51 = vpop.f32.mrb[6].mxu0  ;;  %v1390_v52 = vpop.f32.mrb[6].mxu1 }
 0x83a   : > { %1407 = vst [vmem:[%s2251_s8 + $0x60] sm:$0xff] %v1301_v51  ;;  %1409 = vst [vmem:[%s2251_s8 + $0x70] sm:$0xff] %v1390_v52  ;;  %v1303_v53 = vpop.f32.mrb[7].mxu0  ;;  %v1392_v54 = vpop.f32.mrb[7].mxu1 }
 0x83b   : > { %1408 = vst [vmem:[%s2251_s8 + $0x68] sm:$0xff] %v1303_v53  ;;  %1410 = vst [vmem:[%s2251_s8 + $0x78] sm:$0xff] %v1392_v54 }
 0x83c   : > { %2037 = shalt.err (!%p2034_p7)
}
 0x83d   : > { %s2038_s8 = scalar_lea.hbm %s2612_s19, 3072  ;;  %s2042_s17 = scalar_lea.hbm %s2680_s6, 24576 }
 0x83e   : > { %p2039_p9 = scmp.ne.s32.totalorder %s2612_s19, %s2038_s8  ;;  %p2043_p12 = scmp.lt.u32.totalorder %s2612_s19, %s2680_s6 }
 0x83f   : > { %p2044_p13 = scmp.lt.u32.totalorder %s2042_s17, %s2038_s8  ;;  %p2046_p1 = scmp.lt.u32.totalorder %s2038_s8, %s2612_s19 }
 0x840   : > { %p2040_p10 = pnand %p2039_p9, %p2218_p3 }
 0x841   : > { %p2045_p0 = por %p2044_p13, %p2043_p12 }
 0x842   : > { %p2041_p11 = pneg %p2040_p10 }
 0x843   : > { %p2047_p2 = por %p2046_p1, %p2045_p0 }
 0x845   : > { %p2048_p4 = pnand %p2047_p2, %p2041_p11 }
 0x847   : > { %2051 = shalt.err (!%p2048_p4)
}
 0x848   : > { %s2129_s14 = smov 512   ;;  %s2130_s18 = smov 2048  }
 0x849   : > { %s2131_s20 = smov 32  }
 0x84a   : > { %1940 = dma.vmem_to_hbm [thread:$0]  (%p2218_p3), %s2614_s24, 3072, %s2612_s19, %s2622_s29, %s2129_s14, %s2130_s18, %s2131_s20  }
 0x84b PF: > { %p1946_p5 = scmp.ge.s32.totalorder %s2118_s28, 2  ;;  %s1462_s16 = sand.u32 1, %s2090_s21  }
 0x84c   : > { %s1463_s30 = scalar_lea.sflag [#allocation4], %s1462_s16 }
 0x84d   : > { %p1943_p6 = pnand %p1946_p5, %p2227_p8 }
 0x84f   : > { %2085 = dma.done.wait (!%p1943_p6), %s1463_s30, 3072  }
 0x850   : > { %2087 = vsyncadd (!%p1943_p6), %s1463_s30, 4294964224  ;;  %s19_s28 = sadd.s32 1, %s2118_s28   ;;  %s2697_s10 = sld [smem:[#allocation6_spill]] }
 0x851   : > { %p16_p7 = scmp.ge.s32.totalorder %s19_s28, 10   ;;  %s2698_s21 = smov %s2094_s22 }
 0x852   : > { %s2699_s22 = smov %s2098_s23  ;;  %s2700_s23 = smov %s2236_s15 }
 0x853   : > { %s2701_s24 = smov %s2110_s26  ;;  %s2702_s25 = smov %s2114_s27 }
 0x854   : > { %s2703_s26 = smov %s2706_s7  ;;  %18 = sbr.rel (!%p16_p7) target bundleno = 8 (0x8), region = 94 }
 0x856   : > { %s2704_s27 = smov %s2697_s10 }
 0x85b   :  { %1468 = vsyncpa [#allocation4], 1 }
 0x85c   :  { %1470 = vsyncpa [#allocation4 + $0x1], 1 }

</bundles_post_ra>
